<compile_context>
chip_gen: v5e
topology: v5e:2x2
jax: 0.10.0
libtpu: 0.0.40
codegen_flags: <defaults>
</compile_context>

<pallas_src>
import functools

import jax
import jax.numpy as jnp
from jax.experimental import pallas as pl
from jax.experimental.pallas import tpu as pltpu


def _round_up(x, m):
    return (x + m - 1) // m * m


def _critic_kernel(x_ref, w1_ref, b1_ref, w2_ref, b2_ref, w3_ref, b3_ref,
                   o_ref, *, mxu_dtype):
    # x_ref : (D_pad, TM)  state tile, batch on lanes
    # w1_ref: (H, D_pad)   b1_ref: (H, 1)
    # w2_ref: (H, H)       b2_ref: (H, 1)
    # w3_ref: (H, 1)       b3_ref: (1, 1) scalar in SMEM
    # o_ref : (1, TM)      critic values, batch on lanes (lane-dense store)
    x = x_ref[...].astype(mxu_dtype)

    h1 = jnp.dot(w1_ref[...].astype(mxu_dtype), x,
                 preferred_element_type=jnp.float32) + b1_ref[...]
    h1 = jnp.maximum(h1, 0.0)                                  # (H, TM) f32

    h2 = jnp.dot(w2_ref[...].astype(mxu_dtype), h1.astype(mxu_dtype),
                 preferred_element_type=jnp.float32) + b2_ref[...]
    h2 = jnp.maximum(h2, 0.0)                                  # (H, TM) f32

    # hidden -> 1 head on VPU/XLU: broadcast-multiply + sublane reduction.
    v = jnp.sum(h2 * w3_ref[...], axis=0, keepdims=True) + b3_ref[0, 0]
    o_ref[...] = v.astype(o_ref.dtype)                         # (1, TM)


def critic_forward(state, params, *, tm=None, mxu_dtype=jnp.float32):
    """state: (B, input_dim) f32.  Returns (B, 1) f32 critic values."""
    B, d_in = state.shape
    w1, b1 = params["w1"], params["b1"]
    w2, b2 = params["w2"], params["b2"]
    w3, b3 = params["w3"], params["b3"]
    H, d_pad = w1.shape

    if tm is None:
        tm = 512 if B >= 512 else 128          # lane-multiple batch tile
    n_tiles = pl.cdiv(B, tm)
    b_pad = n_tiles * tm

    # Layout plumbing (wrapper side): batch on the lane axis, zero-padded.
    x_t = jnp.zeros((d_pad, b_pad), state.dtype).at[:d_in, :B].set(state.T)

    kernel = functools.partial(_critic_kernel, mxu_dtype=mxu_dtype)

    def resident(shape):                       # DMA'd once, stays in VMEM
        return pl.BlockSpec(shape, lambda i: (0, 0))

    out = pl.pallas_call(
        kernel,
        out_shape=jax.ShapeDtypeStruct((n_tiles, tm), jnp.float32),
        grid=(n_tiles,),
        in_specs=[
            pl.BlockSpec((d_pad, tm), lambda i: (0, i)),        # state tile
            resident((H, d_pad)),                               # w1
            resident((H, 1)),                                   # b1
            resident((H, H)),                                   # w2
            resident((H, 1)),                                   # b2
            resident((H, 1)),                                   # w3 (VPU head)
            pl.BlockSpec(memory_space=pltpu.MemorySpace.SMEM),  # b3 scalar
        ],
        out_specs=pl.BlockSpec((1, tm), lambda i: (i, 0)),      # lane-dense
        compiler_params=pltpu.CompilerParams(
            dimension_semantics=("parallel",)),
    )(x_t, w1, b1, w2, b2, w3, b3)

    return out.reshape(b_pad)[:B].reshape(B, 1)


def _xavier_uniform(key, out_features, in_features, dtype=jnp.float32):
    # matches torch.nn.init.xavier_uniform_ (gain=1) on an (out, in) weight
    limit = (6.0 / (in_features + out_features)) ** 0.5
    return jax.random.uniform(key, (out_features, in_features), dtype,
                              -limit, limit)


def init_critic_params(key, input_dim, hidden_dim):
    """PyTorch-layout (out, in) weights, zero-padded to TPU-friendly shapes."""
    k1, k2, k3 = jax.random.split(key, 3)
    d_pad = _round_up(input_dim, 8)       # sublane-friendly input dim
    h_pad = _round_up(hidden_dim, 128)    # lane-aligned hidden dim
    w1 = jnp.zeros((h_pad, d_pad), jnp.float32)
    w1 = w1.at[:hidden_dim, :input_dim].set(
        _xavier_uniform(k1, hidden_dim, input_dim))
    w2 = jnp.zeros((h_pad, h_pad), jnp.float32)
    w2 = w2.at[:hidden_dim, :hidden_dim].set(
        _xavier_uniform(k2, hidden_dim, hidden_dim))
    w3 = jnp.zeros((h_pad, 1), jnp.float32)
    w3 = w3.at[:hidden_dim, :].set(_xavier_uniform(k3, 1, hidden_dim).T)
    return {
        "w1": w1, "b1": jnp.zeros((h_pad, 1), jnp.float32),
        "w2": w2, "b2": jnp.zeros((h_pad, 1), jnp.float32),
        "w3": w3, "b3": jnp.zeros((1, 1), jnp.float32),
    }


def critic_forward_ref(state, params, mxu_dtype=jnp.float32):
    """Pure-JAX reference (same math, incl. optional MXU-operand cast)."""
    d_in = state.shape[1]
    d_pad = params["w1"].shape[1]
    x = jnp.pad(state, ((0, 0), (0, d_pad - d_in)))
    c = lambda a: a.astype(mxu_dtype)
    h1 = jnp.maximum(
        jnp.dot(c(x), c(params["w1"]).T, preferred_element_type=jnp.float32)
        + params["b1"][:, 0], 0.0)
    h2 = jnp.maximum(
        jnp.dot(c(h1), c(params["w2"]).T, preferred_element_type=jnp.float32)
        + params["b2"][:, 0], 0.0)
    return (jnp.dot(h2, params["w3"], preferred_element_type=jnp.float32)
            + params["b3"][0, 0])


if __name__ == "__main__":
    key = jax.random.PRNGKey(0)
    k_param, k_small, k_big = jax.random.split(key, 3)

    batch, input_dim, hidden_dim = 2, 4, 32        # CartPole-like sizes
    params = init_critic_params(k_param, input_dim, hidden_dim)

    # Small batch (single 128-wide tile), f32 path.
    state = jax.random.normal(k_small, (batch, input_dim), jnp.float32)
    out = jax.block_until_ready(critic_forward(state, params))
    ref = critic_forward_ref(state, params)
    assert out.shape == (batch, 1)
    assert jnp.allclose(out, ref, atol=1e-4, rtol=1e-4), \
        float(jnp.max(jnp.abs(out - ref)))

    # Larger, non-tile-multiple batch: exercises the batch grid + padding.
    big = jax.random.normal(k_big, (1000, input_dim), jnp.float32)
    out_big = jax.block_until_ready(critic_forward(big, params, tm=512))
    ref_big = critic_forward_ref(big, params)
    assert out_big.shape == (1000, 1)
    assert jnp.allclose(out_big, ref_big, atol=1e-4, rtol=1e-4), \
        float(jnp.max(jnp.abs(out_big - ref_big)))

    # bf16-MXU-operand path (v6e/v7x), checked against a bf16-cast reference.
    out_bf = jax.block_until_ready(
        critic_forward(big, params, tm=512, mxu_dtype=jnp.bfloat16))
    ref_bf = critic_forward_ref(big, params, mxu_dtype=jnp.bfloat16)
    assert jnp.allclose(out_bf, ref_bf, atol=1e-3, rtol=1e-3), \
        float(jnp.max(jnp.abs(out_bf - ref_bf)))

    print("KERNEL_OK")
</pallas_src>

<mosaic_0001>
module attributes {stable_mosaic.version = 11 : i64} {
  func.func @_critic_kernel(%arg0: i32, %arg1: memref<8x128xf32, #tpu.memory_space<vmem>>, %arg2: memref<128x8xf32, #tpu.memory_space<vmem>>, %arg3: memref<128x1xf32, #tpu.memory_space<vmem>>, %arg4: memref<128x128xf32, #tpu.memory_space<vmem>>, %arg5: memref<128x1xf32, #tpu.memory_space<vmem>>, %arg6: memref<128x1xf32, #tpu.memory_space<vmem>>, %arg7: memref<1x1xf32, #tpu.memory_space<smem>>, %arg8: memref<1x128xf32, #tpu.memory_space<vmem>>) attributes {dimension_semantics = [#tpu.dimension_semantics<parallel>], iteration_bounds = array<i64: 1>, scalar_prefetch = 0 : i64, scratch_operands = 0 : i64, tpu.core_type = #tpu.core_type<tc>, window_params = [{transform_indices = @transform_0, window_bounds = array<i64: 8, 128>}, {pipeline_mode = #tpu.pipeline_mode<synchronous>, transform_indices = @transform_1, window_bounds = array<i64: 128, 8>}, {pipeline_mode = #tpu.pipeline_mode<synchronous>, transform_indices = @transform_2, window_bounds = array<i64: 128, 1>}, {pipeline_mode = #tpu.pipeline_mode<synchronous>, transform_indices = @transform_3, window_bounds = array<i64: 128, 128>}, {pipeline_mode = #tpu.pipeline_mode<synchronous>, transform_indices = @transform_4, window_bounds = array<i64: 128, 1>}, {pipeline_mode = #tpu.pipeline_mode<synchronous>, transform_indices = @transform_5, window_bounds = array<i64: 128, 1>}, {transform_indices = @transform_6, window_bounds = array<i64: 1, 1>}, {transform_indices = @transform_7, window_bounds = array<i64: 1, 128>}]} {
    %c0 = arith.constant 0 : index
    %c0_0 = arith.constant 0 : index
    %0 = vector.load %arg1[%c0, %c0_0] : memref<8x128xf32, #tpu.memory_space<vmem>>, vector<8x128xf32>
    %c0_1 = arith.constant 0 : index
    %c0_2 = arith.constant 0 : index
    %1 = vector.load %arg2[%c0_1, %c0_2] : memref<128x8xf32, #tpu.memory_space<vmem>>, vector<128x8xf32>
    %cst = arith.constant dense<0.000000e+00> : vector<128x128xf32>
    %2 = tpu.matmul %1, %0, %cst {dimension_numbers = #tpu.dot_dimension_numbers<[1], [0], [0], [1], [0, 0, 1, 1], [], []>} : vector<128x8xf32>, vector<8x128xf32>, vector<128x128xf32> -> vector<128x128xf32>
    %c0_3 = arith.constant 0 : index
    %c0_4 = arith.constant 0 : index
    %3 = vector.load %arg3[%c0_3, %c0_4] : memref<128x1xf32, #tpu.memory_space<vmem>>, vector<128x1xf32>
    %4 = vector.broadcast %3 : vector<128x1xf32> to vector<128x128xf32>
    %5 = arith.addf %2, %4 : vector<128x128xf32>
    %cst_5 = arith.constant 0.000000e+00 : f32
    %6 = vector.broadcast %cst_5 : f32 to vector<128x128xf32>
    %7 = arith.maximumf %5, %6 : vector<128x128xf32>
    %c0_6 = arith.constant 0 : index
    %c0_7 = arith.constant 0 : index
    %8 = vector.load %arg4[%c0_6, %c0_7] : memref<128x128xf32, #tpu.memory_space<vmem>>, vector<128x128xf32>
    %cst_8 = arith.constant dense<0.000000e+00> : vector<128x128xf32>
    %9 = tpu.matmul %8, %7, %cst_8 {dimension_numbers = #tpu.dot_dimension_numbers<[1], [0], [0], [1], [0, 0, 1, 1], [], []>} : vector<128x128xf32>, vector<128x128xf32>, vector<128x128xf32> -> vector<128x128xf32>
    %c0_9 = arith.constant 0 : index
    %c0_10 = arith.constant 0 : index
    %10 = vector.load %arg5[%c0_9, %c0_10] : memref<128x1xf32, #tpu.memory_space<vmem>>, vector<128x1xf32>
    %11 = vector.broadcast %10 : vector<128x1xf32> to vector<128x128xf32>
    %12 = arith.addf %9, %11 : vector<128x128xf32>
    %cst_11 = arith.constant 0.000000e+00 : f32
    %13 = vector.broadcast %cst_11 : f32 to vector<128x128xf32>
    %14 = arith.maximumf %12, %13 : vector<128x128xf32>
    %c0_12 = arith.constant 0 : index
    %c0_13 = arith.constant 0 : index
    %15 = vector.load %arg6[%c0_12, %c0_13] : memref<128x1xf32, #tpu.memory_space<vmem>>, vector<128x1xf32>
    %16 = vector.broadcast %15 : vector<128x1xf32> to vector<128x128xf32>
    %17 = arith.mulf %14, %16 : vector<128x128xf32>
    %cst_14 = arith.constant dense<0.000000e+00> : vector<128xf32>
    %18 = vector.multi_reduction <add>, %17, %cst_14 [0] : vector<128x128xf32> to vector<128xf32>
    %19 = vector.shape_cast %18 : vector<128xf32> to vector<1x128xf32>
    %c0_15 = arith.constant 0 : index
    %c0_16 = arith.constant 0 : index
    %20 = memref.load %arg7[%c0_15, %c0_16] : memref<1x1xf32, #tpu.memory_space<smem>>
    %21 = vector.broadcast %20 : f32 to vector<1x128xf32>
    %22 = arith.addf %19, %21 : vector<1x128xf32>
    %c0_17 = arith.constant 0 : index
    %c0_18 = arith.constant 0 : index
    %23 = vector.load %arg8[%c0_17, %c0_18] : memref<1x128xf32, #tpu.memory_space<vmem>>, vector<1x128xf32>
    tpu.vector_store %arg8[%c0_17, %c0_18], %22 {strides = array<i32>} : memref<1x128xf32, #tpu.memory_space<vmem>>, vector<1x128xf32>,
    return
  }
  func.func @transform_0(%arg0: i32) -> (i32, i32) {
    %c0_i32 = arith.constant 0 : i32
    %c0_i32_0 = arith.constant 0 : i32
    return %c0_i32, %arg0 : i32, i32
  }
  func.func @transform_1(%arg0: i32) -> (i32, i32) {
    %c0_i32 = arith.constant 0 : i32
    %c0_i32_0 = arith.constant 0 : i32
    %c0_i32_1 = arith.constant 0 : i32
    return %c0_i32, %c0_i32_0 : i32, i32
  }
  func.func @transform_2(%arg0: i32) -> (i32, i32) {
    %c0_i32 = arith.constant 0 : i32
    %c0_i32_0 = arith.constant 0 : i32
    %c0_i32_1 = arith.constant 0 : i32
    return %c0_i32, %c0_i32_0 : i32, i32
  }
  func.func @transform_3(%arg0: i32) -> (i32, i32) {
    %c0_i32 = arith.constant 0 : i32
    %c0_i32_0 = arith.constant 0 : i32
    %c0_i32_1 = arith.constant 0 : i32
    return %c0_i32, %c0_i32_0 : i32, i32
  }
  func.func @transform_4(%arg0: i32) -> (i32, i32) {
    %c0_i32 = arith.constant 0 : i32
    %c0_i32_0 = arith.constant 0 : i32
    %c0_i32_1 = arith.constant 0 : i32
    return %c0_i32, %c0_i32_0 : i32, i32
  }
  func.func @transform_5(%arg0: i32) -> (i32, i32) {
    %c0_i32 = arith.constant 0 : i32
    %c0_i32_0 = arith.constant 0 : i32
    %c0_i32_1 = arith.constant 0 : i32
    return %c0_i32, %c0_i32_0 : i32, i32
  }
  func.func @transform_6(%arg0: i32) -> (i32, i32) {
    %c0_i32 = arith.constant 0 : i32
    %c0_i32_0 = arith.constant 0 : i32
    %c0_i32_1 = arith.constant 0 : i32
    return %c0_i32, %c0_i32_0 : i32, i32
  }
  func.func @transform_7(%arg0: i32) -> (i32, i32) {
    %c0_i32 = arith.constant 0 : i32
    %c0_i32_0 = arith.constant 0 : i32
    return %arg0, %c0_i32 : i32, i32
  }
}

</mosaic_0001>

<bundles_post_ra>
// kernel: tpu_custom_call.1
= control target key start
LH: loop header
LB: loop body
LE: loop exit
PB: predicated region body
PF: predicated region fallthrough
CT: control target
= control target key end

     0   :  { %v697_v2 = vmov 0   ;;  %vm141_vm0 = vcmask 64512   ;;  %s1037_s0 = inlined_call_operand.vmem [shape: f32[8,128], index: 0, kind: input, shape index: {}]   ;;  %s1038_s1 = inlined_call_operand.vmem [shape: f32[128,8], index: 1, kind: input, shape index: {}]   ;;  %s1039_s2 = inlined_call_operand.vmem [shape: f32[128,1], index: 2, kind: input, shape index: {}]   ;;  %s1040_s3 = inlined_call_operand.vmem [shape: f32[128,128], index: 3, kind: input, shape index: {}]   ;;  %s1041_s4 = inlined_call_operand.vmem [shape: f32[128,1], index: 4, kind: input, shape index: {}]   ;;  %s1042_s5 = inlined_call_operand.vmem [shape: f32[128,1], index: 5, kind: input, shape index: {}]   ;;  %s1043_s6 = inlined_call_operand.<no memory space> [shape: f32[1,1], index: 6, kind: input, shape index: {}]   ;;  %s1044_s7 = inlined_call_operand.hbm [shape: f32[1,128], index: 7, kind: output, shape index: {}]  }
   0x1   :  { %v28_v0 = vld [vmem:[%s1037_s0] sm:$0xff]  ;;  %v60_v1 = vld [vmem:[%s1039_s2 + $0x78] sm:$0xff]  ;;  %670 = vset.pattern.permute.xlu2 %v697_v2  ;;  %669 = vset.pattern.permute.xlu1 %v697_v2  ;;  %v59_v3 = vld [vmem:[%s1039_s2 + $0x70] sm:$0xff] }
   0x2   :  { %v57_v4 = vld [vmem:[%s1039_s2 + $0x60] sm:$0xff]  ;;  %668 = vset.pattern.permute.xlu0 %v697_v2  ;;  %205 = vmatpush.msra.mxu0 %v28_v0  ;;  %v39_v6 = vld [vmem:[%s1038_s1 + $0x50] sm:$0xff]  ;;  %v58_v8 = vld [vmem:[%s1039_s2 + $0x68] sm:$0xff] }
   0x3   :  { %v29_v5 = vld [vmem:[%s1038_s1] sm:$0xff]  ;;  %633 = vmatpush.msra.mxu3 %v28_v0  ;;  %138 = vperm.xlu0 %668, %v60_v1   ;;  %v56_v9 = vld [vmem:[%s1039_s2 + $0x58] sm:$0xff] }
   0x4   :  { %133 = vperm.xlu1 %669, %v59_v3   ;;  %123 = vperm.xlu2 %670, %v57_v4   ;;  %v45_v7 = vld [vmem:[%s1039_s2] sm:$0xff] }
   0x5   :  { %617 = vmatmul.msk.f32.vlgmr.msra.gmra.mxu0 %vm141_vm0, %v29_v5  ;;  %627 = vmatmul.msk.f32.vlgmr.msra.gmra.mxu3 %vm141_vm0, %v39_v6 }
   0x6   :  { %13 = vsyncpa [#allocation4], 0  ;;  %v30_v10 = vld [vmem:[%s1038_s1 + $0x8] sm:$0xff]  ;;  %v40_v11 = vld [vmem:[%s1038_s1 + $0x58] sm:$0xff]  ;;  %s698_s8 = smov [#allocation3]   ;;  %s608_s11 = sshll.u32 %s1044_s7, 4  ;;  %s609_s11 = int_to_ptr.hbm [resolvable:$true] %s608_s11 }
   0x7   :  { %v55_v12 = vld [vmem:[%s1039_s2 + $0x50] sm:$0xff]  ;;  %v54_v13 = vld [vmem:[%s1039_s2 + $0x48] sm:$0xff]  ;;  %v53_v14 = vld [vmem:[%s1039_s2 + $0x40] sm:$0xff]  ;;  %s606_s9 = sshll.u32 %s698_s8, 4  ;;  %s607_s9 = int_to_ptr.vmem [resolvable:$true] %s606_s9 }
   0x8   :  { %v31_v15 = vld [vmem:[%s1038_s1 + $0x10] sm:$0xff]  ;;  %v41_v16 = vld [vmem:[%s1038_s1 + $0x60] sm:$0xff]  ;;  %v52_v17 = vld [vmem:[%s1039_s2 + $0x38] sm:$0xff] }
   0x9   :  { %v51_v18 = vld [vmem:[%s1039_s2 + $0x30] sm:$0xff]  ;;  %v50_v19 = vld [vmem:[%s1039_s2 + $0x28] sm:$0xff]  ;;  %v32_v20 = vld [vmem:[%s1038_s1 + $0x18] sm:$0xff] }
   0xa   :  { %v42_v21 = vld [vmem:[%s1038_s1 + $0x68] sm:$0xff]  ;;  %v49_v22 = vld [vmem:[%s1039_s2 + $0x20] sm:$0xff]  ;;  %v48_v23 = vld [vmem:[%s1039_s2 + $0x18] sm:$0xff] }
   0xb   :  { %63 = vperm.xlu0 %668, %v45_v7   ;;  %v47_v24 = vld [vmem:[%s1039_s2 + $0x10] sm:$0xff]  ;;  %v33_v25 = vld [vmem:[%s1038_s1 + $0x20] sm:$0xff]  ;;  %v46_v27 = vld [vmem:[%s1039_s2 + $0x8] sm:$0xff] }
   0xc   :  { %128 = vperm.xlu1 %669, %v58_v8   ;;  %118 = vperm.xlu2 %670, %v56_v9   ;;  %v43_v26 = vld [vmem:[%s1038_s1 + $0x70] sm:$0xff]  ;;  %v287_v28 = vld [vmem:[%s1041_s4] sm:$0xff]  ;;  %v288_v29 = vld [vmem:[%s1041_s4 + $0x8] sm:$0xff] }
   0xd   :  { %618 = vmatmul.msk.f32.gmra.mxu0 %vm141_vm0, %v30_v10  ;;  %628 = vmatmul.msk.f32.gmra.mxu3 %vm141_vm0, %v40_v11  ;;  %v34_v30 = vld [vmem:[%s1038_s1 + $0x28] sm:$0xff]  ;;  %v44_v31 = vld [vmem:[%s1038_s1 + $0x78] sm:$0xff]  ;;  %v289_v32 = vld [vmem:[%s1041_s4 + $0x10] sm:$0xff] }
   0xe   :  { %v290_v33 = vld [vmem:[%s1041_s4 + $0x18] sm:$0xff]  ;;  %v291_v34 = vld [vmem:[%s1041_s4 + $0x20] sm:$0xff]  ;;  %v35_v35 = vld [vmem:[%s1038_s1 + $0x30] sm:$0xff] }
   0xf   :  { %v292_v36 = vld [vmem:[%s1041_s4 + $0x28] sm:$0xff]  ;;  %v293_v37 = vld [vmem:[%s1041_s4 + $0x30] sm:$0xff]  ;;  %v294_v38 = vld [vmem:[%s1041_s4 + $0x38] sm:$0xff] }
  0x10   :  { %v36_v39 = vld [vmem:[%s1038_s1 + $0x38] sm:$0xff]  ;;  %v295_v40 = vld [vmem:[%s1041_s4 + $0x40] sm:$0xff]  ;;  %v296_v41 = vld [vmem:[%s1041_s4 + $0x48] sm:$0xff] }
  0x11   :  { %v297_v42 = vld [vmem:[%s1041_s4 + $0x50] sm:$0xff]  ;;  %v37_v43 = vld [vmem:[%s1038_s1 + $0x40] sm:$0xff]  ;;  %v298_v44 = vld [vmem:[%s1041_s4 + $0x58] sm:$0xff] }
  0x12   :  { %v299_v45 = vld [vmem:[%s1041_s4 + $0x60] sm:$0xff]  ;;  %v300_v46 = vld [vmem:[%s1041_s4 + $0x68] sm:$0xff]  ;;  %v301_v48 = vld [vmem:[%s1041_s4 + $0x70] sm:$0xff] }
  0x13   :  { %113 = vperm.xlu0 %668, %v55_v12   ;;  %v38_v47 = vld [vmem:[%s1038_s1 + $0x48] sm:$0xff]  ;;  %v302_v49 = vld [vmem:[%s1041_s4 + $0x78] sm:$0xff]  ;;  %v464_v50 = vld [vmem:[%s1042_s5] sm:$0xff] }
  0x14   :  { %108 = vperm.xlu1 %669, %v54_v13   ;;  %103 = vperm.xlu2 %670, %v53_v14   ;;  %v465_v51 = vld [vmem:[%s1042_s5 + $0x8] sm:$0xff]  ;;  %v466_v52 = vld [vmem:[%s1042_s5 + $0x10] sm:$0xff]  ;;  %v467_v53 = vld [vmem:[%s1042_s5 + $0x18] sm:$0xff] }
  0x15   :  { %619 = vmatmul.msk.f32.gmra.mxu0 %vm141_vm0, %v31_v15  ;;  %629 = vmatmul.msk.f32.gmra.mxu3 %vm141_vm0, %v41_v16  ;;  %v468_v54 = vld [vmem:[%s1042_s5 + $0x20] sm:$0xff]  ;;  %v469_v55 = vld [vmem:[%s1042_s5 + $0x28] sm:$0xff]  ;;  %v470_v56 = vld [vmem:[%s1042_s5 + $0x30] sm:$0xff] }
  0x16   :  { %v471_v57 = vld [vmem:[%s1042_s5 + $0x38] sm:$0xff]  ;;  %v472_v58 = vld [vmem:[%s1042_s5 + $0x40] sm:$0xff]  ;;  %v473_v59 = vld [vmem:[%s1042_s5 + $0x48] sm:$0xff] }
  0x17   :  { %v474_v60 = vld [vmem:[%s1042_s5 + $0x50] sm:$0xff]  ;;  %v475_v61 = vld [vmem:[%s1042_s5 + $0x58] sm:$0xff]  ;;  %v476_v62 = vld [vmem:[%s1042_s5 + $0x60] sm:$0xff] }
  0x18   :  { %v477_v63 = vld [vmem:[%s1042_s5 + $0x68] sm:$0xff]  ;;  %v478_v0 = vld [vmem:[%s1042_s5 + $0x70] sm:$0xff]  ;;  %v479_v1 = vld [vmem:[%s1042_s5 + $0x78] sm:$0xff] }
  0x1b   :  { %98 = vperm.xlu0 %668, %v52_v17  }
  0x1c   :  { %93 = vperm.xlu1 %669, %v51_v18   ;;  %88 = vperm.xlu2 %670, %v50_v19  }
  0x1d   :  { %620 = vmatmul.msk.f32.gmra.mxu0 %vm141_vm0, %v32_v20  ;;  %630 = vmatmul.msk.f32.gmra.mxu3 %vm141_vm0, %v42_v21 }
  0x23   :  { %83 = vperm.xlu0 %668, %v49_v22  }
  0x24   :  { %78 = vperm.xlu1 %669, %v48_v23   ;;  %73 = vperm.xlu2 %670, %v47_v24  }
  0x25   :  { %621 = vmatmul.msk.f32.gmra.mxu0 %vm141_vm0, %v33_v25  ;;  %631 = vmatmul.msk.f32.gmra.mxu3 %vm141_vm0, %v43_v26 }
  0x2b   :  { %68 = vperm.xlu0 %668, %v46_v27  }
  0x2c   :  { %305 = vperm.xlu1 %669, %v287_v28   ;;  %310 = vperm.xlu2 %670, %v288_v29  }
  0x2d   :  { %622 = vmatmul.msk.f32.gmra.mxu0 %vm141_vm0, %v34_v30  ;;  %632 = vmatmul.msk.f32.gmra.mxu3 %vm141_vm0, %v44_v31 }
  0x33   :  { %315 = vperm.xlu0 %668, %v289_v32  }
  0x34   :  { %320 = vperm.xlu1 %669, %v290_v33   ;;  %325 = vperm.xlu2 %670, %v291_v34  }
  0x35   :  { %623 = vmatmul.msk.f32.gmra.mxu0 %vm141_vm0, %v35_v35 }
  0x3b   :  { %330 = vperm.xlu0 %668, %v292_v36  }
  0x3c   :  { %335 = vperm.xlu1 %669, %v293_v37   ;;  %340 = vperm.xlu2 %670, %v294_v38  }
  0x3d   :  { %624 = vmatmul.msk.f32.gmra.mxu0 %vm141_vm0, %v36_v39 }
  0x43   :  { %345 = vperm.xlu0 %668, %v295_v40  }
  0x44   :  { %350 = vperm.xlu1 %669, %v296_v41   ;;  %355 = vperm.xlu2 %670, %v297_v42  }
  0x45   :  { %625 = vmatmul.msk.f32.gmra.mxu0 %vm141_vm0, %v37_v43 }
  0x4b   :  { %360 = vperm.xlu0 %668, %v298_v44  }
  0x4c   :  { %365 = vperm.xlu1 %669, %v299_v45   ;;  %370 = vperm.xlu2 %670, %v300_v46  }
  0x4d   :  { %626 = vmatmul.msk.f32.gmra.mxu0 %vm141_vm0, %v38_v47 }
  0x53   :  { %375 = vperm.xlu0 %668, %v301_v48  }
  0x54   :  { %380 = vperm.xlu1 %669, %v302_v49   ;;  %482 = vperm.xlu2 %670, %v464_v50  }
  0x5b   :  { %487 = vperm.xlu0 %668, %v465_v51  }
  0x5c   :  { %492 = vperm.xlu1 %669, %v466_v52   ;;  %497 = vperm.xlu2 %670, %v467_v53  }
  0x5e   :  { %v124_v15 = vpop.permute.xlu2 %123 }
  0x63   :  { %502 = vperm.xlu0 %668, %v468_v54  }
  0x64   :  { %507 = vperm.xlu1 %669, %v469_v55   ;;  %512 = vperm.xlu2 %670, %v470_v56  }
  0x66   :  { %v119_v26 = vpop.permute.xlu2 %118 }
  0x6b   :  { %517 = vperm.xlu0 %668, %v471_v57  }
  0x6c   :  { %522 = vperm.xlu1 %669, %v472_v58   ;;  %527 = vperm.xlu2 %670, %v473_v59  }
  0x6e   :  { %v104_v36 = vpop.permute.xlu2 %103 }
  0x73   :  { %532 = vperm.xlu0 %668, %v474_v60  }
  0x74   :  { %537 = vperm.xlu1 %669, %v475_v61   ;;  %542 = vperm.xlu2 %670, %v476_v62  }
  0x75   :  { %v139_v11 = vpop.permute.xlu0 %138 }
  0x76   :  { %v134_v12 = vpop.permute.xlu1 %133  ;;  %v89_v43 = vpop.permute.xlu2 %88 }
  0x7b   :  { %547 = vperm.xlu0 %668, %v477_v63  }
  0x7c   :  { %552 = vperm.xlu1 %669, %v478_v0   ;;  %557 = vperm.xlu2 %670, %v479_v1  }
  0x7d   :  { %v960_v16 = vpop.permute.xlu0 %63 }
  0x7e   :  { %v129_v20 = vpop.permute.xlu1 %128  ;;  %v74_v56 = vpop.permute.xlu2 %73 }
  0x82   :  { %v950_v2 = vpop.f32.mrf.mxu0 }
  0x83   :  { %v208_v62 = vadd.f32 %v950_v2, %v960_v16  ;;  %v277_v2 = vld [vmem:[%s1040_s3 + $0x30] sm:$0xff]  ;;  %v282_v16 = vld [vmem:[%s1040_s3 + $0x58] sm:$0xff] }
  0x85   :  { %v114_v29 = vpop.permute.xlu0 %113  ;;  %v255_v1 = vmax.f32 %v208_v62, 0.0 }
  0x86   :  { %v109_v35 = vpop.permute.xlu1 %108 }
  0x88   :  { %v237_v3 = vpop.f32.mrf.mxu3 }
  0x89   :  { %v238_v30 = vadd.f32 %v237_v3, %v114_v29  ;;  %v271_v3 = vld [vmem:[%s1040_s3] sm:$0xff] }
  0x8a   :  { %v952_v4 = vpop.f32.mrf.mxu0 }
  0x8b   :  { %v265_v34 = vmax.f32 %v238_v30, 0.0 }
  0x8d   :  { %v99_v37 = vpop.permute.xlu0 %98 }
  0x8e   :  { %v94_v39 = vpop.permute.xlu1 %93 }
  0x90   :  { %v240_v5 = vpop.f32.mrf.mxu3 }
  0x91   :  { %v241_v27 = vadd.f32 %v240_v5, %v119_v26  ;;  %v272_v5 = vld [vmem:[%s1040_s3 + $0x8] sm:$0xff] }
  0x92   :  { %v954_v6 = vpop.f32.mrf.mxu0 }
  0x93   :  { %v266_v33 = vmax.f32 %v241_v27, 0.0  ;;  %v214_v58 = vadd.f32 %v954_v6, %v74_v56  ;;  %v278_v6 = vld [vmem:[%s1040_s3 + $0x38] sm:$0xff] }
  0x95   :  { %v84_v44 = vpop.permute.xlu0 %83  ;;  %v257_v63 = vmax.f32 %v214_v58, 0.0 }
  0x96   :  { %v79_v53 = vpop.permute.xlu1 %78 }
  0x98   :  { %v243_v7 = vpop.f32.mrf.mxu3 }
  0x99   :  { %v244_v25 = vadd.f32 %v243_v7, %v124_v15  ;;  %v285_v7 = vld [vmem:[%s1040_s3 + $0x70] sm:$0xff]  ;;  %v276_v15 = vld [vmem:[%s1040_s3 + $0x28] sm:$0xff] }
  0x9a   :  { %v956_v8 = vpop.f32.mrf.mxu0 }
  0x9b   :  { %v267_v31 = vmax.f32 %v244_v25, 0.0  ;;  %v217_v54 = vadd.f32 %v956_v8, %v79_v53  ;;  %v273_v8 = vld [vmem:[%s1040_s3 + $0x10] sm:$0xff] }
  0x9d   :  { %v69_v57 = vpop.permute.xlu0 %68  ;;  %v258_v60 = vmax.f32 %v217_v54, 0.0 }
  0x9e   :  { %v211_v61 = vadd.f32 %v952_v4, %v69_v57  ;;  %v284_v4 = vld [vmem:[%s1040_s3 + $0x68] sm:$0xff] }
  0xa0   :  { %v246_v9 = vpop.f32.mrf.mxu3  ;;  %v256_v0 = vmax.f32 %v211_v61, 0.0 }
  0xa1   :  { %v247_v22 = vadd.f32 %v246_v9, %v129_v20  ;;  %v279_v9 = vld [vmem:[%s1040_s3 + $0x40] sm:$0xff] }
  0xa2   :  { %v958_v10 = vpop.f32.mrf.mxu0 }
  0xa3   :  { %v268_v28 = vmax.f32 %v247_v22, 0.0  ;;  %v220_v51 = vadd.f32 %v958_v10, %v84_v44  ;;  %v286_v10 = vld [vmem:[%s1040_s3 + $0x78] sm:$0xff] }
  0xa5   :  { %v259_v59 = vmax.f32 %v220_v51, 0.0  ;;  %v316_v20 = vpop.permute.xlu0 %315 }
  0xa8   :  { %v249_v13 = vpop.f32.mrf.mxu3 }
  0xa9   :  { %v250_v17 = vadd.f32 %v249_v13, %v134_v12  ;;  %v280_v12 = vld [vmem:[%s1040_s3 + $0x48] sm:$0xff]  ;;  %v275_v13 = vld [vmem:[%s1040_s3 + $0x20] sm:$0xff] }
  0xaa   :  { %v222_v14 = vpop.f32.mrf.mxu0 }
  0xab   :  { %v269_v23 = vmax.f32 %v250_v17, 0.0  ;;  %v223_v49 = vadd.f32 %v222_v14, %v89_v43  ;;  %v281_v14 = vld [vmem:[%s1040_s3 + $0x50] sm:$0xff]  ;;  %v283_v17 = vld [vmem:[%s1040_s3 + $0x60] sm:$0xff] }
  0xad   :  { %v260_v55 = vmax.f32 %v223_v49, 0.0 }
  0xb0   :  { %v252_v18 = vpop.f32.mrf.mxu3 }
  0xb1   :  { %v253_v19 = vadd.f32 %v252_v18, %v139_v11  ;;  %v274_v11 = vld [vmem:[%s1040_s3 + $0x18] sm:$0xff]  ;;  %v306_v18 = vpop.permute.xlu1 %305 }
  0xb2   :  { %v225_v21 = vpop.f32.mrf.mxu0 }
  0xb3   :  { %v270_v24 = vmax.f32 %v253_v19, 0.0  ;;  %v226_v47 = vadd.f32 %v225_v21, %v94_v39  ;;  %v311_v19 = vpop.permute.xlu2 %310 }
  0xb5   :  { %383 = vmatpush.msra.mxu1 %v270_v24  ;;  %634 = vmatpush.msra.mxu2 %v270_v24  ;;  %v261_v52 = vmax.f32 %v226_v47, 0.0 }
  0xb6   :  { %635 = vmatpush.msrb.mxu3 %v270_v24 }
  0xb7   :  { %384 = vmatpush.msra.mxu1 %v269_v23  ;;  %636 = vmatpush.msra.mxu2 %v269_v23 }
  0xb8   :  { %637 = vmatpush.msrb.mxu3 %v269_v23  ;;  %v331_v23 = vpop.permute.xlu0 %330 }
  0xb9   :  { %385 = vmatpush.msra.mxu1 %v268_v28  ;;  %638 = vmatpush.msra.mxu2 %v268_v28  ;;  %v321_v21 = vpop.permute.xlu1 %320 }
  0xba   :  { %639 = vmatpush.msrb.mxu3 %v268_v28  ;;  %v228_v32 = vpop.f32.mrf.mxu0 }
  0xbb   :  { %386 = vmatpush.msra.mxu1 %v267_v31  ;;  %640 = vmatpush.msra.mxu2 %v267_v31  ;;  %v229_v45 = vadd.f32 %v228_v32, %v99_v37  ;;  %v326_v22 = vpop.permute.xlu2 %325 }
  0xbc   :  { %641 = vmatpush.msrb.mxu3 %v267_v31 }
  0xbd   :  { %387 = vmatpush.msra.mxu1 %v266_v33  ;;  %642 = vmatpush.msra.mxu2 %v266_v33  ;;  %v262_v50 = vmax.f32 %v229_v45, 0.0 }
  0xbe   :  { %643 = vmatpush.msrb.mxu3 %v266_v33 }
  0xbf   :  { %388 = vmatpush.msra.mxu1 %v265_v34  ;;  %644 = vmatpush.msra.mxu2 %v265_v34 }
  0xc0   :  { %645 = vmatpush.msrb.mxu3 %v265_v34  ;;  %v346_v26 = vpop.permute.xlu0 %345 }
  0xc1   :  { %v336_v24 = vpop.permute.xlu1 %335 }
  0xc2   :  { %v231_v38 = vpop.f32.mrf.mxu0 }
  0xc3   :  { %v232_v41 = vadd.f32 %v231_v38, %v104_v36  ;;  %v341_v25 = vpop.permute.xlu2 %340 }
  0xc5   :  { %v263_v48 = vmax.f32 %v232_v41, 0.0 }
  0xc8   :  { %v1016_v30 = vpop.permute.xlu0 %360 }
  0xc9   :  { %v351_v27 = vpop.permute.xlu1 %350 }
  0xca   :  { %v234_v40 = vpop.f32.mrf.mxu0 }
  0xcb   :  { %v235_v42 = vadd.f32 %v234_v40, %v109_v35  ;;  %v356_v28 = vpop.permute.xlu2 %355 }
  0xcd   :  { %v264_v46 = vmax.f32 %v235_v42, 0.0 }
  0xcf   :  { %389 = vmatpush.msra.mxu1 %v264_v46  ;;  %646 = vmatpush.msra.mxu2 %v264_v46 }
  0xd0   :  { %647 = vmatpush.msrb.mxu3 %v264_v46  ;;  %v1022_v35 = vpop.permute.xlu0 %375 }
  0xd1   :  { %390 = vmatpush.msra.mxu1 %v263_v48  ;;  %648 = vmatpush.msra.mxu2 %v263_v48  ;;  %v1018_v31 = vpop.permute.xlu1 %365 }
  0xd2   :  { %649 = vmatpush.msrb.mxu3 %v263_v48 }
  0xd3   :  { %391 = vmatpush.msra.mxu1 %v262_v50  ;;  %650 = vmatpush.msra.mxu2 %v262_v50  ;;  %v1020_v32 = vpop.permute.xlu2 %370 }
  0xd4   :  { %651 = vmatpush.msrb.mxu3 %v262_v50 }
  0xd5   :  { %392 = vmatpush.msra.mxu1 %v261_v52  ;;  %652 = vmatpush.msra.mxu2 %v261_v52 }
  0xd6   :  { %653 = vmatpush.msrb.mxu3 %v261_v52 }
  0xd7   :  { %393 = vmatpush.msra.mxu1 %v260_v55  ;;  %654 = vmatpush.msra.mxu2 %v260_v55 }
  0xd8   :  { %655 = vmatpush.msrb.mxu3 %v260_v55  ;;  %v488_v40 = vpop.permute.xlu0 %487 }
  0xd9   :  { %394 = vmatpush.msra.mxu1 %v259_v59  ;;  %656 = vmatpush.msra.mxu2 %v259_v59  ;;  %v1024_v36 = vpop.permute.xlu1 %380 }
  0xda   :  { %657 = vmatpush.msrb.mxu3 %v259_v59 }
  0xdb   :  { %395 = vmatpush.msra.mxu1 %v258_v60  ;;  %658 = vmatpush.msra.mxu2 %v258_v60  ;;  %v483_v37 = vpop.permute.xlu2 %482 }
  0xdc   :  { %659 = vmatpush.msrb.mxu3 %v258_v60 }
  0xdd   :  { %396 = vmatpush.msra.mxu1 %v257_v63  ;;  %660 = vmatpush.msra.mxu2 %v257_v63 }
  0xde   :  { %661 = vmatpush.msrb.mxu3 %v257_v63 }
  0xdf   :  { %397 = vmatpush.msra.mxu1 %v256_v0  ;;  %662 = vmatpush.msra.mxu2 %v256_v0 }
  0xe0   :  { %663 = vmatpush.msrb.mxu3 %v256_v0  ;;  %v503_v48 = vpop.permute.xlu0 %502 }
  0xe1   :  { %398 = vmatpush.msra.mxu1 %v255_v1  ;;  %664 = vmatpush.msra.mxu2 %v255_v1  ;;  %v493_v41 = vpop.permute.xlu1 %492 }
  0xe2   :  { %665 = vmatpush.msrb.mxu3 %v255_v1  ;;  %399 = vmatmul.f32.vlgmr.msra.gmra.mxu1 %v271_v3 }
  0xe3   :  { %417 = vmatmul.f32.vlgmr.msra.gmra.mxu2 %v277_v2  ;;  %438 = vmatmul.f32.vlgmr.msrb.gmra.mxu3 %v284_v4  ;;  %v498_v43 = vpop.permute.xlu2 %497 }
  0xe9   :  { %v508_v53 = vpop.permute.xlu1 %507 }
  0xea   :  { %402 = vmatmul.f32.gmra.mxu1 %v272_v5  ;;  %v518_v5 = vpop.permute.xlu0 %517 }
  0xeb   :  { %420 = vmatmul.f32.gmra.mxu2 %v278_v6  ;;  %441 = vmatmul.f32.gmra.mxu3 %v285_v7  ;;  %v513_v57 = vpop.permute.xlu2 %512 }
  0xf2   :  { %405 = vmatmul.f32.gmra.mxu1 %v273_v8 }
  0xf3   :  { %423 = vmatmul.f32.gmra.mxu2 %v279_v9  ;;  %444 = vmatmul.f32.gmra.mxu3 %v286_v10  ;;  %v523_v10 = vpop.permute.xlu1 %522 }
  0xfa   :  { %408 = vmatmul.f32.gmra.mxu1 %v274_v11 }
  0xfb   :  { %426 = vmatmul.f32.gmra.mxu2 %v280_v12 }
 0x102   :  { %411 = vmatmul.f32.gmra.mxu1 %v275_v13 }
 0x103   :  { %429 = vmatmul.f32.gmra.mxu2 %v281_v14 }
 0x10a   :  { %414 = vmatmul.f32.gmra.mxu1 %v276_v15  ;;  %v528_v15 = vpop.permute.xlu2 %527 }
 0x10b   :  { %432 = vmatmul.f32.gmra.mxu2 %v282_v16 }
 0x113   :  { %435 = vmatmul.f32.gmra.mxu2 %v283_v17 }
 0x15f   :  { %v400_v29 = vpop.f32.mrf.mxu1 }
 0x160   :  { %v401_v46 = vadd.f32 %v400_v29, %v306_v18 }
 0x162   :  { %v448_v54 = vmax.f32 %v401_v46, 0.0 }
 0x164   :  { %v560_v61 = vmul.f32 %v483_v37, %v448_v54 }
 0x166   :  { %v418_v33 = vpop.f32.mrf.mxu2  ;;  %v439_v58 = vpop.f32.mrf.mxu3 }
 0x167   :  { %v403_v34 = vpop.f32.mrf.mxu1  ;;  %v419_v0 = vadd.f32 %v418_v33, %v336_v24 }
 0x168   :  { %v404_v45 = vadd.f32 %v403_v34, %v311_v19 }
 0x169   :  { %v454_v11 = vmax.f32 %v419_v0, 0.0 }
 0x16a   :  { %v449_v49 = vmax.f32 %v404_v45, 0.0  ;;  %v440_v45 = vadd.f32 %v439_v58, %v1020_v32 }
 0x16c   :  { %v561_v59 = vmul.f32 %v488_v40, %v449_v49 }
 0x16e   :  { %v421_v38 = vpop.f32.mrf.mxu2  ;;  %v576_v1 = vadd.f32 %v561_v59, %v560_v61  ;;  %v442_v17 = vpop.f32.mrf.mxu3 }
 0x16f   :  { %v406_v39 = vpop.f32.mrf.mxu1  ;;  %v422_v6 = vadd.f32 %v421_v38, %v341_v25  ;;  %v533_v38 = vpop.permute.xlu0 %532  ;;  %v443_v49 = vadd.f32 %v442_v17, %v1022_v35 }
 0x170   :  { %v407_v47 = vadd.f32 %v406_v39, %v316_v20 }
 0x171   :  { %v455_v16 = vmax.f32 %v422_v6, 0.0  ;;  %v598_v6 = vstv %s1043_s6 }
 0x172   :  { %v450_v55 = vmax.f32 %v407_v47, 0.0 }
 0x173   :  { %v567_v25 = vmul.f32 %v518_v5, %v455_v16 }
 0x174   :  { %v562_v62 = vmul.f32 %v493_v41, %v450_v55  ;;  %v538_v41 = vpop.permute.xlu1 %537 }
 0x176   :  { %v424_v42 = vpop.f32.mrf.mxu2  ;;  %v577_v7 = vadd.f32 %v576_v1, %v562_v62  ;;  %v445_v46 = vpop.f32.mrf.mxu3 }
 0x177   :  { %v409_v44 = vpop.f32.mrf.mxu1  ;;  %v425_v12 = vadd.f32 %v424_v42, %v346_v26  ;;  %v548_v59 = vpop.permute.xlu0 %547 }
 0x178   :  { %v410_v50 = vadd.f32 %v409_v44, %v321_v21  ;;  %v566_v21 = vmul.f32 %v513_v57, %v454_v11  ;;  %v543_v44 = vpop.permute.xlu2 %542 }
 0x17a   :  { %v451_v60 = vmax.f32 %v410_v50, 0.0 }
 0x17c   :  { %v563_v3 = vmul.f32 %v498_v43, %v451_v60  ;;  %v553_v61 = vpop.permute.xlu1 %552 }
 0x17e   :  { %v427_v51 = vpop.f32.mrf.mxu2  ;;  %v578_v13 = vadd.f32 %v577_v7, %v563_v3 }
 0x17f   :  { %v412_v52 = vpop.f32.mrf.mxu1  ;;  %v428_v18 = vadd.f32 %v427_v51, %v351_v27 }
 0x180   :  { %v413_v56 = vadd.f32 %v412_v52, %v326_v22  ;;  %v456_v22 = vmax.f32 %v425_v12, 0.0  ;;  %v461_v52 = vmax.f32 %v440_v45, 0.0  ;;  %v558_v0 = vpop.permute.xlu2 %557 }
 0x181   :  { %v457_v34 = vmax.f32 %v428_v18, 0.0 }
 0x182   :  { %v452_v63 = vmax.f32 %v413_v56, 0.0  ;;  %v568_v26 = vmul.f32 %v523_v10, %v456_v22  ;;  %v462_v56 = vmax.f32 %v443_v49, 0.0  ;;  %v573_v60 = vmul.f32 %v548_v59, %v461_v52 }
 0x183   :  { %v569_v42 = vmul.f32 %v528_v15, %v457_v34 }
 0x184   :  { %v564_v8 = vmul.f32 %v503_v48, %v452_v63  ;;  %v574_v62 = vmul.f32 %v553_v61, %v462_v56 }
 0x186   :  { %v430_v2 = vpop.f32.mrf.mxu2  ;;  %v579_v19 = vadd.f32 %v578_v13, %v564_v8 }
 0x187   :  { %v415_v4 = vpop.f32.mrf.mxu1  ;;  %v431_v24 = vadd.f32 %v430_v2, %v356_v28 }
 0x188   :  { %v416_v9 = vadd.f32 %v415_v4, %v331_v23 }
 0x189   :  { %v458_v39 = vmax.f32 %v431_v24, 0.0 }
 0x18a   :  { %v453_v14 = vmax.f32 %v416_v9, 0.0 }
 0x18b   :  { %v570_v28 = vmul.f32 %v533_v38, %v458_v39 }
 0x18c   :  { %v565_v20 = vmul.f32 %v508_v53, %v453_v14  ;;  %v446_v53 = vadd.f32 %v445_v46, %v1024_v36 }
 0x18e   :  { %v580_v29 = vadd.f32 %v579_v19, %v565_v20  ;;  %v433_v33 = vpop.f32.mrf.mxu2  ;;  %v463_v32 = vmax.f32 %v446_v53, 0.0 }
 0x18f   :  { %v434_v23 = vadd.f32 %v433_v33, %v1016_v30 }
 0x190   :  { %v581_v37 = vadd.f32 %v580_v29, %v566_v21  ;;  %v575_v35 = vmul.f32 %v558_v0, %v463_v32 }
 0x191   :  { %v459_v43 = vmax.f32 %v434_v23, 0.0 }
 0x192   :  { %v582_v40 = vadd.f32 %v581_v37, %v567_v25 }
 0x193   :  { %v571_v30 = vmul.f32 %v538_v41, %v459_v43 }
 0x194   :  { %v583_v27 = vadd.f32 %v582_v40, %v568_v26 }
 0x196   :  { %v584_v47 = vadd.f32 %v583_v27, %v569_v42  ;;  %v436_v48 = vpop.f32.mrf.mxu2 }
 0x197   :  { %v437_v50 = vadd.f32 %v436_v48, %v1018_v31 }
 0x198   :  { %v585_v51 = vadd.f32 %v584_v47, %v570_v28 }
 0x199   :  { %v460_v54 = vmax.f32 %v437_v50, 0.0 }
 0x19a   :  { %v586_v55 = vadd.f32 %v585_v51, %v571_v30 }
 0x19b   :  { %v572_v57 = vmul.f32 %v543_v44, %v460_v54 }
 0x19d   :  { %v587_v58 = vadd.f32 %v586_v55, %v572_v57 }
 0x19f   :  { %v588_v63 = vadd.f32 %v587_v58, %v573_v60 }
 0x1a1   :  { %v589_v1 = vadd.f32 %v588_v63, %v574_v62 }
 0x1a3   :  { %v590_v31 = vadd.f32 %v589_v1, %v575_v35 }
 0x1a5   :  { %v591_v3 = vrot.slane %v590_v31, 4 }
 0x1a7   :  { %v592_v2 = vadd.f32 %v591_v3, %v590_v31 }
 0x1a9   :  { %v593_v4 = vrot.slane %v592_v2, 2 }
 0x1ab   :  { %v594_v5 = vadd.f32 %v593_v4, %v592_v2 }
 0x1ad   :  { %v595_v36 = vrot.slane %v594_v5, 1 }
 0x1af   :  { %v596_v7 = vadd.f32 %v595_v36, %v594_v5 }
 0x1b1   :  { %v599_v8 = vadd.f32 %v598_v6, %v596_v7 }
 0x1b3   :  { %600 = vst [vmem:[#allocation3] sm:$0x1] %v599_v8 }
 0x1b4   :  { %611 = dma.vmem_to_hbm [thread:$0]  %s607_s9, 16, %s609_s11, [#allocation4]  }
 0x1b5   :  { %695 = dma.done.wait [#allocation4], 16  }
 0x1b6   :  { %696 = vsyncadd [#allocation4], 4294967280 }
 0x1b7   :  { %616 = vsyncpa [#allocation4], 1 }

</bundles_post_ra>
